<compile_context>
chip_gen: v7x
topology: tpu7x:2x2x1
jax: 0.10.0
libtpu: 0.0.40
codegen_flags: <defaults>
</compile_context>

<pallas_src>
import functools

import jax
import jax.numpy as jnp
from jax import lax
from jax.experimental import pallas as pl
from jax.experimental.pallas import tpu as pltpu


def _mixed_loss_kernel(pred_ref, gt_ref, grad_acc_ref, l1_acc_ref, *,
                       tb, cp, b_total, ragged):
    """One grid step: accumulate lane-wide partial sums of
         |sobel(pred - gt)|  into grad_acc_ref (1, 1, W-2)
         |pred - gt|         into l1_acc_ref   (1, 1, W)

    pred_ref / gt_ref : (tb, H, W) block of image planes (original dtype).
    The block is processed `cp` planes at a time so the f32 temporaries
    (d / sy / dy / gx / gy) stay chunk-sized rather than block-sized.
    """
    s = pl.program_id(0)

    @pl.when(s == 0)
    def _init():
        grad_acc_ref[...] = jnp.zeros_like(grad_acc_ref)
        l1_acc_ref[...] = jnp.zeros_like(l1_acc_ref)

    _, H, W = pred_ref.shape
    n_chunks = tb // cp                 # static: tb is a multiple of cp
    block_start = s * tb                # global plane index of this block

    def chunk_body(i, carry):
        start_p = i * cp
        p = pred_ref[pl.ds(start_p, cp), :, :].astype(jnp.float32)
        g = gt_ref[pl.ds(start_p, cp), :, :].astype(jnp.float32)
        d = p - g

        if ragged:
            # Ragged tail handled in-kernel (no wrapper-side jnp.pad): planes
            # whose global index >= b_total hold unspecified data from the
            # clamped DMA; select() them to 0 so they contribute exactly 0 to
            # both |.| sums (select does not propagate NaN/Inf).
            plane_idx = lax.broadcasted_iota(jnp.int32, (cp, 1, 1), 0)
            plane_idx = plane_idx + (block_start + start_p)
            d = jnp.where(plane_idx < b_total, d, 0.0)

        # L1 term: reduce over plane axis (VALU vreg adds) and row axis
        # (XLU sublane reduce, otherwise idle) -> one lane-wide row.
        l1_acc_ref[...] += jnp.sum(jnp.abs(d), axis=(0, 1), keepdims=True)

        # Grad term: conv is linear, so |sobel(p) - sobel(g)| == |sobel(p - g)|.
        # Separable Sobel sharing the two vertical passes:
        #   G_x = [1,2,1]^T (vertical)  then [1,0,-1] (horizontal)
        #   G_y = [1,0,-1]^T (vertical) then [1,2,1]  (horizontal)
        sy = d[:, 0:H - 2, :] + 2.0 * d[:, 1:H - 1, :] + d[:, 2:H, :]
        dy = d[:, 0:H - 2, :] - d[:, 2:H, :]
        gx = sy[:, :, 0:W - 2] - sy[:, :, 2:W]
        gy = dy[:, :, 0:W - 2] + 2.0 * dy[:, :, 1:W - 1] + dy[:, :, 2:W]
        grad_acc_ref[...] += jnp.sum(jnp.abs(gx) + jnp.abs(gy),
                                     axis=(0, 1), keepdims=True)
        return carry

    if n_chunks == 1:
        chunk_body(0, 0)
    else:
        lax.fori_loop(0, n_chunks, chunk_body, 0, unroll=(n_chunks <= 8))


def mixed_loss(output, ground_truth, *, grad=True, l1=True,
               _max_block_planes=None, _max_chunk_planes=None):
    """MixedLoss(grad=True, L1=True).forward(output, ground_truth).

    bf16 (or other narrow) inputs are supported as-is and halve HBM traffic;
    all math is performed in f32 inside the kernel.
    """
    N, C, H, W = output.shape
    assert H >= 3 and W >= 3, "VALID 3x3 Sobel needs H, W >= 3"
    # C > 1 is treated depthwise (each plane convolved independently), matching
    # imgrad's single-input-channel 3x3 kernel; the spec is exercised with C=1.
    B = N * C

    pred = output.reshape(B, H, W)      # no dtype cast, no pad: minimal HBM traffic
    gt = ground_truth.reshape(B, H, W)

    itemsize = max(jnp.dtype(pred.dtype).itemsize, jnp.dtype(gt.dtype).itemsize)
    # VMEM footprints use the lane/sublane-padded plane size ((8,128) tiling).
    padded_plane_elems = (pl.cdiv(H, 8) * 8) * (pl.cdiv(W, 128) * 128)
    padded_plane_bytes = padded_plane_elems * itemsize

    # Chunk size (planes processed per inner-loop iteration): ~256 KiB of f32
    # temporaries per array -> bounded live ranges, no spills.
    cp = int(max(1, min((64 * 1024) // padded_plane_elems, B)))
    if _max_chunk_planes is not None:
        cp = int(max(1, min(cp, _max_chunk_planes)))

    # Block size (planes per grid step): ~2 MiB of VMEM per operand block, so
    # 2 operands x 2 pipeline buffers ~ 8 MiB; amortizes the ~0.35us per-step
    # overhead while leaving headroom on v7x's 64 MiB VMEM.
    target_block_bytes = 2 * 1024 * 1024
    tb = int(max(1, min(target_block_bytes // padded_plane_bytes, B)))
    if _max_block_planes is not None:
        tb = int(max(1, min(tb, _max_block_planes)))
    tb = max(cp, (tb // cp) * cp)        # tb multiple of cp, and cp <= tb <= B
    cp = min(cp, tb)
    steps = int(pl.cdiv(B, tb))
    # tb <= B guarantees the last block's start < B (never fully OOB); only the
    # last block can be ragged, and the in-kernel mask zeroes its extra planes.
    ragged = (steps * tb) != B

    kernel = functools.partial(_mixed_loss_kernel, tb=tb, cp=cp,
                               b_total=B, ragged=ragged)

    # Explicit VMEM budget: 2 operands x 2 pipeline buffers x block
    # + ~10 chunk-sized f32 temporaries + slack (accumulators are tiny).
    need = 2 * 2 * tb * padded_plane_bytes + 10 * cp * padded_plane_elems * 4 + (1 << 20)
    vmem_limit = int(max(32 << 20, min(2 * need, 48 << 20)))
    vmem_limit = int(max(vmem_limit, need + (2 << 20)))

    flops = 18 * B * H * W               # ~18 VALU ops per element (no MXU work)
    bytes_accessed = (B * H * W * (jnp.dtype(pred.dtype).itemsize +
                                   jnp.dtype(gt.dtype).itemsize)
                      + 4 * (2 * W - 2))

    grad_parts, l1_parts = pl.pallas_call(
        kernel,
        out_shape=(
            jax.ShapeDtypeStruct((1, 1, W - 2), jnp.float32),
            jax.ShapeDtypeStruct((1, 1, W), jnp.float32),
        ),
        grid_spec=pltpu.PrefetchScalarGridSpec(
            num_scalar_prefetch=0,
            grid=(steps,),
            in_specs=[
                pl.BlockSpec((tb, H, W), lambda s: (s, 0, 0)),
                pl.BlockSpec((tb, H, W), lambda s: (s, 0, 0)),
            ],
            out_specs=[
                pl.BlockSpec((1, 1, W - 2), lambda s: (0, 0, 0)),
                pl.BlockSpec((1, 1, W), lambda s: (0, 0, 0)),
            ],
        ),
        compiler_params=pltpu.CompilerParams(
            dimension_semantics=("arbitrary",),   # reduction axis, resident accumulators
            vmem_limit_bytes=vmem_limit,
        ),
        cost_estimate=pl.CostEstimate(
            flops=int(flops), transcendentals=0,
            bytes_accessed=int(bytes_accessed)),
    )(pred, gt)

    # Final tiny reduction + normalization outside the kernel. Normalizers are
    # host-side floats (no int32 overflow for huge N*H*W).
    grad_count = 2.0 * float(B) * float(H - 2) * float(W - 2)
    l1_count = float(B) * float(H) * float(W)
    loss = jnp.float32(0.0)
    if grad:
        loss = loss + jnp.sum(grad_parts) / jnp.float32(grad_count)
    if l1:
        loss = loss + 0.1 * (jnp.sum(l1_parts) / jnp.float32(l1_count))
    return loss


def _ref_mixed_loss(output, gt):
    """Pure-JAX reference of the PyTorch MixedLoss for validation."""
    kx = jnp.array([[1., 0., -1.], [2., 0., -2.], [1., 0., -1.]], jnp.float32)
    ky = kx.T

    def imgrad(img):
        N, C, H, W = img.shape
        x = img.reshape(N * C, 1, H, W).astype(jnp.float32)

        def conv(x, k):
            return jax.lax.conv_general_dilated(
                x, k[None, None], window_strides=(1, 1), padding="VALID")

        gx = conv(x, kx).reshape(N, C, -1)
        gy = conv(x, ky).reshape(N, C, -1)
        return jnp.concatenate([gx, gy], axis=1)

    grad_loss = jnp.mean(jnp.abs(imgrad(output) - imgrad(gt)))
    l1_loss = jnp.mean(jnp.abs(output.astype(jnp.float32) - gt.astype(jnp.float32)))
    return grad_loss + 0.1 * l1_loss


if __name__ == "__main__":
    key = jax.random.PRNGKey(0)
    k1, k2, k3, k4, k5, k6 = jax.random.split(key, 6)

    # 1) Primary test: N=2, C=1 (imgrad's conv has in_channels=1), 16x16 planes.
    out1 = jax.random.normal(k1, (2, 1, 16, 16), dtype=jnp.float32)
    gt1 = jax.random.normal(k2, (2, 1, 16, 16), dtype=jnp.float32)
    loss1 = mixed_loss(out1, gt1)
    jax.block_until_ready(loss1)
    ref1 = _ref_mixed_loss(out1, gt1)
    assert jnp.allclose(loss1, ref1, rtol=1e-5, atol=1e-5), (loss1, ref1)

    # 2) Odd batch, non-square plane (single step, no raggedness).
    out2 = jax.random.normal(k3, (3, 1, 32, 24), dtype=jnp.float32)
    gt2 = jax.random.normal(k4, (3, 1, 32, 24), dtype=jnp.float32)
    loss2 = mixed_loss(out2, gt2)
    jax.block_until_ready(loss2)
    ref2 = _ref_mixed_loss(out2, gt2)
    assert jnp.allclose(loss2, ref2, rtol=1e-5, atol=1e-5), (loss2, ref2)

    # 3) Force small blocks/chunks to exercise the ragged last block (in-kernel
    #    plane mask, no jnp.pad) and the multi-chunk fori_loop path.
    out3 = jax.random.normal(k5, (5, 1, 16, 16), dtype=jnp.float32)
    gt3 = jax.random.normal(k6, (5, 1, 16, 16), dtype=jnp.float32)
    loss3 = mixed_loss(out3, gt3, _max_block_planes=2, _max_chunk_planes=1)
    jax.block_until_ready(loss3)
    ref3 = _ref_mixed_loss(out3, gt3)
    assert jnp.allclose(loss3, ref3, rtol=1e-5, atol=1e-5), (loss3, ref3)

    # 4) bf16 inputs move over HBM as bf16 (half the bytes); math stays f32.
    out4 = out1.astype(jnp.bfloat16)
    gt4 = gt1.astype(jnp.bfloat16)
    loss4 = mixed_loss(out4, gt4)
    jax.block_until_ready(loss4)
    ref4 = _ref_mixed_loss(out4, gt4)
    assert jnp.allclose(loss4, ref4, rtol=1e-4, atol=1e-5), (loss4, ref4)

    print("KERNEL_OK")
</pallas_src>

<mosaic_0001>
module attributes {stable_mosaic.version = 11 : i64} {
  func.func @_mixed_loss_kernel(%arg0: i32, %arg1: memref<2x16x16xf32, #tpu.memory_space<vmem>>, %arg2: memref<2x16x16xf32, #tpu.memory_space<vmem>>, %arg3: memref<1x1x14xf32, #tpu.memory_space<vmem>>, %arg4: memref<1x1x16xf32, #tpu.memory_space<vmem>>) attributes {dimension_semantics = [#tpu.dimension_semantics<arbitrary>], iteration_bounds = array<i64: 1>, scalar_prefetch = 0 : i64, scratch_operands = 0 : i64, tpu.core_type = #tpu.core_type<tc>, window_params = [{transform_indices = @transform_0, window_bounds = array<i64: 2, 16, 16>}, {transform_indices = @transform_1, window_bounds = array<i64: 2, 16, 16>}, {pipeline_mode = #tpu.pipeline_mode<synchronous>, transform_indices = @transform_2, window_bounds = array<i64: 1, 1, 14>}, {pipeline_mode = #tpu.pipeline_mode<synchronous>, transform_indices = @transform_3, window_bounds = array<i64: 1, 1, 16>}]} {
    %c0_i32 = arith.constant 0 : i32
    %0 = arith.cmpi eq, %arg0, %c0_i32 : i32
    %1 = arith.extui %0 : i1 to i32
    %c0_i32_0 = arith.constant 0 : i32
    %2 = arith.cmpi ne, %1, %c0_i32_0 : i32
    scf.if %2 {
      %cst_21 = arith.constant 0.000000e+00 : f32
      %40 = vector.broadcast %cst_21 : f32 to vector<1x1x14xf32>
      %c0_22 = arith.constant 0 : index
      %c0_23 = arith.constant 0 : index
      %c0_24 = arith.constant 0 : index
      %41 = vector.load %arg3[%c0_22, %c0_23, %c0_24] : memref<1x1x14xf32, #tpu.memory_space<vmem>>, vector<1x1x14xf32>
      tpu.vector_store %arg3[%c0_22, %c0_23, %c0_24], %40 {strides = array<i32>} : memref<1x1x14xf32, #tpu.memory_space<vmem>>, vector<1x1x14xf32>,
      %cst_25 = arith.constant 0.000000e+00 : f32
      %42 = vector.broadcast %cst_25 : f32 to vector<1x1x16xf32>
      %c0_26 = arith.constant 0 : index
      %c0_27 = arith.constant 0 : index
      %c0_28 = arith.constant 0 : index
      %43 = vector.load %arg4[%c0_26, %c0_27, %c0_28] : memref<1x1x16xf32, #tpu.memory_space<vmem>>, vector<1x1x16xf32>
      tpu.vector_store %arg4[%c0_26, %c0_27, %c0_28], %42 {strides = array<i32>} : memref<1x1x16xf32, #tpu.memory_space<vmem>>, vector<1x1x16xf32>,
    } else {
    }
    %c0 = arith.constant 0 : index
    %c0_1 = arith.constant 0 : index
    %c0_2 = arith.constant 0 : index
    %3 = vector.load %arg1[%c0, %c0_1, %c0_2] : memref<2x16x16xf32, #tpu.memory_space<vmem>>, vector<2x16x16xf32>
    %c0_3 = arith.constant 0 : index
    %c0_4 = arith.constant 0 : index
    %c0_5 = arith.constant 0 : index
    %4 = vector.load %arg2[%c0_3, %c0_4, %c0_5] : memref<2x16x16xf32, #tpu.memory_space<vmem>>, vector<2x16x16xf32>
    %5 = arith.subf %3, %4 : vector<2x16x16xf32>
    %c0_6 = arith.constant 0 : index
    %c0_7 = arith.constant 0 : index
    %c0_8 = arith.constant 0 : index
    %6 = vector.load %arg4[%c0_6, %c0_7, %c0_8] : memref<1x1x16xf32, #tpu.memory_space<vmem>>, vector<1x1x16xf32>
    %7 = math.absf %5 : vector<2x16x16xf32>
    %cst = arith.constant dense<0.000000e+00> : vector<16xf32>
    %8 = vector.multi_reduction <add>, %7, %cst [0, 1] : vector<2x16x16xf32> to vector<16xf32>
    %9 = vector.shape_cast %8 : vector<16xf32> to vector<1x1x16xf32>
    %10 = arith.addf %6, %9 : vector<1x1x16xf32>
    %c0_9 = arith.constant 0 : index
    %c0_10 = arith.constant 0 : index
    %c0_11 = arith.constant 0 : index
    %11 = vector.load %arg4[%c0_9, %c0_10, %c0_11] : memref<1x1x16xf32, #tpu.memory_space<vmem>>, vector<1x1x16xf32>
    tpu.vector_store %arg4[%c0_9, %c0_10, %c0_11], %10 {strides = array<i32>} : memref<1x1x16xf32, #tpu.memory_space<vmem>>, vector<1x1x16xf32>,
    %12 = vector.extract_strided_slice %5 {offsets = [0, 0, 0], sizes = [2, 14, 16], strides = [1, 1, 1]} : vector<2x16x16xf32> to vector<2x14x16xf32>
    %13 = vector.extract_strided_slice %5 {offsets = [0, 1, 0], sizes = [2, 14, 16], strides = [1, 1, 1]} : vector<2x16x16xf32> to vector<2x14x16xf32>
    %cst_12 = arith.constant 2.000000e+00 : f32
    %14 = vector.broadcast %cst_12 : f32 to vector<2x14x16xf32>
    %15 = arith.mulf %14, %13 : vector<2x14x16xf32>
    %16 = arith.addf %12, %15 : vector<2x14x16xf32>
    %17 = vector.extract_strided_slice %5 {offsets = [0, 2, 0], sizes = [2, 14, 16], strides = [1, 1, 1]} : vector<2x16x16xf32> to vector<2x14x16xf32>
    %18 = arith.addf %16, %17 : vector<2x14x16xf32>
    %19 = vector.extract_strided_slice %5 {offsets = [0, 0, 0], sizes = [2, 14, 16], strides = [1, 1, 1]} : vector<2x16x16xf32> to vector<2x14x16xf32>
    %20 = vector.extract_strided_slice %5 {offsets = [0, 2, 0], sizes = [2, 14, 16], strides = [1, 1, 1]} : vector<2x16x16xf32> to vector<2x14x16xf32>
    %21 = arith.subf %19, %20 : vector<2x14x16xf32>
    %22 = vector.extract_strided_slice %18 {offsets = [0, 0, 0], sizes = [2, 14, 14], strides = [1, 1, 1]} : vector<2x14x16xf32> to vector<2x14x14xf32>
    %23 = vector.extract_strided_slice %18 {offsets = [0, 0, 2], sizes = [2, 14, 14], strides = [1, 1, 1]} : vector<2x14x16xf32> to vector<2x14x14xf32>
    %24 = arith.subf %22, %23 : vector<2x14x14xf32>
    %25 = vector.extract_strided_slice %21 {offsets = [0, 0, 0], sizes = [2, 14, 14], strides = [1, 1, 1]} : vector<2x14x16xf32> to vector<2x14x14xf32>
    %26 = vector.extract_strided_slice %21 {offsets = [0, 0, 1], sizes = [2, 14, 14], strides = [1, 1, 1]} : vector<2x14x16xf32> to vector<2x14x14xf32>
    %cst_13 = arith.constant 2.000000e+00 : f32
    %27 = vector.broadcast %cst_13 : f32 to vector<2x14x14xf32>
    %28 = arith.mulf %27, %26 : vector<2x14x14xf32>
    %29 = arith.addf %25, %28 : vector<2x14x14xf32>
    %30 = vector.extract_strided_slice %21 {offsets = [0, 0, 2], sizes = [2, 14, 14], strides = [1, 1, 1]} : vector<2x14x16xf32> to vector<2x14x14xf32>
    %31 = arith.addf %29, %30 : vector<2x14x14xf32>
    %c0_14 = arith.constant 0 : index
    %c0_15 = arith.constant 0 : index
    %c0_16 = arith.constant 0 : index
    %32 = vector.load %arg3[%c0_14, %c0_15, %c0_16] : memref<1x1x14xf32, #tpu.memory_space<vmem>>, vector<1x1x14xf32>
    %33 = math.absf %24 : vector<2x14x14xf32>
    %34 = math.absf %31 : vector<2x14x14xf32>
    %35 = arith.addf %33, %34 : vector<2x14x14xf32>
    %cst_17 = arith.constant dense<0.000000e+00> : vector<14xf32>
    %36 = vector.multi_reduction <add>, %35, %cst_17 [0, 1] : vector<2x14x14xf32> to vector<14xf32>
    %37 = vector.shape_cast %36 : vector<14xf32> to vector<1x1x14xf32>
    %38 = arith.addf %32, %37 : vector<1x1x14xf32>
    %c0_18 = arith.constant 0 : index
    %c0_19 = arith.constant 0 : index
    %c0_20 = arith.constant 0 : index
    %39 = vector.load %arg3[%c0_18, %c0_19, %c0_20] : memref<1x1x14xf32, #tpu.memory_space<vmem>>, vector<1x1x14xf32>
    tpu.vector_store %arg3[%c0_18, %c0_19, %c0_20], %38 {strides = array<i32>} : memref<1x1x14xf32, #tpu.memory_space<vmem>>, vector<1x1x14xf32>,
    return
  }
  func.func @transform_0(%arg0: i32) -> (i32, i32, i32) {
    %c0_i32 = arith.constant 0 : i32
    %c0_i32_0 = arith.constant 0 : i32
    %c0_i32_1 = arith.constant 0 : i32
    return %arg0, %c0_i32, %c0_i32_0 : i32, i32, i32
  }
  func.func @transform_1(%arg0: i32) -> (i32, i32, i32) {
    %c0_i32 = arith.constant 0 : i32
    %c0_i32_0 = arith.constant 0 : i32
    %c0_i32_1 = arith.constant 0 : i32
    return %arg0, %c0_i32, %c0_i32_0 : i32, i32, i32
  }
  func.func @transform_2(%arg0: i32) -> (i32, i32, i32) {
    %c0_i32 = arith.constant 0 : i32
    %c0_i32_0 = arith.constant 0 : i32
    %c0_i32_1 = arith.constant 0 : i32
    %c0_i32_2 = arith.constant 0 : i32
    return %c0_i32, %c0_i32_0, %c0_i32_1 : i32, i32, i32
  }
  func.func @transform_3(%arg0: i32) -> (i32, i32, i32) {
    %c0_i32 = arith.constant 0 : i32
    %c0_i32_0 = arith.constant 0 : i32
    %c0_i32_1 = arith.constant 0 : i32
    %c0_i32_2 = arith.constant 0 : i32
    return %c0_i32, %c0_i32_0, %c0_i32_1 : i32, i32, i32
  }
}

</mosaic_0001>

<bundles_post_ra>
// kernel: tpu_custom_call.1
= control target key start
LH: loop header
LB: loop body
LE: loop exit
PB: predicated region body
PF: predicated region fallthrough
CT: control target
= control target key end

     0   :  { %9 = vsyncpa [#allocation3], 0  ;;  %s492_s0 = inlined_call_operand.hbm [shape: f32[2,16,16], index: 0, kind: input, shape index: {}]   ;;  %s493_s1 = inlined_call_operand.hbm [shape: f32[2,16,16], index: 1, kind: input, shape index: {}]   ;;  %s494_s2 = inlined_call_operand.hbm [shape: f32[1,1,14], index: 2, kind: output, shape index: {0}]   ;;  %s495_s3 = inlined_call_operand.hbm [shape: f32[1,1,16], index: 3, kind: output, shape index: {1}]  }
   0x1   :  { %10 = vsyncpa [#allocation6], 0 }
   0x2   :  { %11 = vsyncpa [#allocation4], 0 }
   0x3   :  { %12 = vsyncpa [#allocation9], 0  ;;  %s361_s12 = smov [#allocation2]   ;;  %s265_s16 = scalar_lea.hbm %s492_s0, 512 }
   0x4   :  { %s18_s13 = sshll.u32 %s361_s12, 4  ;;  %p266_p0 = scmp.ne.s32.totalorder %s492_s0, %s265_s16  ;;  %s19_s13 = int_to_ptr.vmem [resolvable:$true] %s18_s13 }
   0x5   :  { %p269_p1 = scmp.lt.u32.totalorder %s265_s16, %s492_s0 }
   0x7   :  { %p271_p2 = pnand %p269_p1, %p266_p0 }
   0x9   :  { %274 = shalt.err (!%p271_p2)
}
   0xa   :  { %s275_s21 = scalar_lea.vmem %s19_s13, 512  ;;  %p280_p4 = scmp.lt.s32.totalorder %s19_s13, %s19_s13 }
   0xb   :  { %p276_p3 = scmp.ne.s32.totalorder %s19_s13, %s275_s21  ;;  %p281_p5 = scmp.lt.s32.totalorder %s275_s21, %s275_s21 }
   0xd   :  { %p282_p6 = por %p281_p5, %p280_p4 }
   0xf   :  { %p283_p7 = pnand %p282_p6, %p276_p3 }
  0x11   :  { %286 = shalt.err (!%p283_p7)
}
  0x12   :  { %s362_s22 = smov 128   ;;  %s363_s23 = smov 8  }
  0x13   :  { %24 = dma.hbm_to_vmem [thread:$0]  %s492_s0, 512, %s19_s13, [#allocation3], %s362_s22, %s362_s22, %s363_s23  }
  0x14   :  { %s364_s26 = smov [#allocation5]   ;;  %s287_s30 = scalar_lea.hbm %s493_s1, 512 }
  0x15   :  { %s30_s27 = sshll.u32 %s364_s26, 4  ;;  %p288_p8 = scmp.ne.s32.totalorder %s493_s1, %s287_s30  ;;  %s31_s27 = int_to_ptr.vmem [resolvable:$true] %s30_s27 }
  0x16   :  { %p291_p9 = scmp.lt.u32.totalorder %s287_s30, %s493_s1 }
  0x18   :  { %p293_p10 = pnand %p291_p9, %p288_p8 }
  0x1a   :  { %296 = shalt.err (!%p293_p10)
}
  0x1b   :  { %s297_s8 = scalar_lea.vmem %s31_s27, 512  ;;  %p302_p12 = scmp.lt.s32.totalorder %s31_s27, %s31_s27 }
  0x1c   :  { %p298_p11 = scmp.ne.s32.totalorder %s31_s27, %s297_s8  ;;  %p303_p13 = scmp.lt.s32.totalorder %s297_s8, %s297_s8 }
  0x1e   :  { %p304_p0 = por %p303_p13, %p302_p12 }
  0x20   :  { %p305_p1 = pnand %p304_p0, %p298_p11 }
  0x22   :  { %308 = shalt.err (!%p305_p1)
}
  0x23   :  { %36 = dma.hbm_to_vmem [thread:$0]  %s493_s1, 512, %s31_s27, [#allocation6], %s362_s22, %s362_s22, %s363_s23  }
  0x24   :  { %353 = dma.done.wait [#allocation3], 512  }
  0x25   :  { %354 = vsyncadd [#allocation3], 4294966784 }
  0x26   :  { %355 = dma.done.wait [#allocation6], 512  }
  0x27   :  { %356 = vsyncadd [#allocation6], 4294966784  ;;  %v52_v0 = vld [vmem:[#allocation2 + $0x8] sm:$0xff]  ;;  %v51_v2 = vld [vmem:[#allocation2] sm:$0xff]  ;;  %vm112_vm0 = vcmask 1045504   ;;  %vm93_vm1 = vcmask 1046528  }
  0x28   :  { %v56_v1 = vld [vmem:[#allocation5 + $0x8] sm:$0xff]  ;;  %v55_v4 = vld [vmem:[#allocation5] sm:$0xff]  ;;  %v53_v5 = vld [vmem:[#allocation2 + $0x10] sm:$0xff]  ;;  %s365_s1 = smov 126   ;;  %s366_s10 = smov 127   ;;  %vm68_vm2 = vcmask 130048  }
  0x29   :  { %v60_v3 = vsub.f32 %v52_v0, %v56_v1  ;;  %v54_v6 = vld [vmem:[#allocation2 + $0x18] sm:$0xff]  ;;  %v59_v7 = vsub.f32 %v51_v2, %v55_v4  ;;  %v57_v8 = vld [vmem:[#allocation5 + $0x10] sm:$0xff]  ;;  %vm47_vm3 = vcmask 106496   ;;  %vm49_vm4 = vcmask 122880   ;;  %s368_s11 = smov [#allocation8]  }
  0x2a   :  { %v58_v9 = vld [vmem:[#allocation5 + $0x18] sm:$0xff]  ;;  %v61_v11 = vsub.f32 %v53_v5, %v57_v8  ;;  %v367_v57 = vmov 0.0   ;;  %s242_s12 = sshll.u32 %s368_s11, 4  ;;  %s243_s12 = int_to_ptr.vmem [resolvable:$true] %s242_s12 }
  0x2b   :  { %v114_v10 = vrot.slane %v60_v3, 2  ;;  %v62_v12 = vsub.f32 %v54_v6, %v58_v9  ;;  %v86_v13 = vmul.f32 2.0, %v60_v3  ;;  %v113_v14 = vrot.slane %v59_v7, 2  ;;  %48 = vst.msk [vmem:[#allocation7] sm:$0x1] %vm47_vm3, %v367_v57  ;;  %s309_s13 = scalar_lea.vmem %s243_s12, 16  ;;  %p314_p3 = scmp.lt.s32.totalorder %s243_s12, %s243_s12 }
  0x2c   :  { %v85_v15 = vmul.f32 2.0, %v59_v7  ;;  %v116_v17 = vrot.slane %v61_v11, 2  ;;  %v87_v22 = vmul.f32 2.0, %v61_v11  ;;  %v64_v38 = vand.u32 2147483647, %v59_v7  ;;  %p310_p2 = scmp.ne.s32.totalorder %s243_s12, %s309_s13  ;;  %s313_s14 = scalar_lea.vmem %s243_s12, 32 }
  0x2d   :  { %v414_v16 = vsub.f32 %v60_v3, %v114_v10  ;;  %v117_v18 = vrot.slane %v62_v12, 2  ;;  %v95_v19 = vrot.slane %v86_v13, 1  ;;  %v115_v20 = vsel %vm112_vm0, %v113_v14, %v114_v10  ;;  %50 = vst.msk [vmem:[#allocation8] sm:$0x1] %vm49_vm4, %v367_v57  ;;  %p315_p4 = scmp.lt.s32.totalorder %s313_s14, %s309_s13 }
  0x2e   :  { %v94_v21 = vrot.slane %v85_v15, 1  ;;  %v88_v23 = vmul.f32 2.0, %v62_v12  ;;  %v419_v24 = vsub.f32 %v59_v7, %v115_v20  ;;  %v97_v31 = vrot.slane %v87_v22, 1 }
  0x2f   :  { %181 = vrot.lane.b32.xlu0 %v414_v16, %s365_s1  ;;  %v152_v25 = vmul.f32 2.0, %v414_v16  ;;  %v118_v26 = vsel %vm112_vm0, %v116_v17, %v117_v18  ;;  %v423_v27 = vsub.f32 %v62_v12, %v117_v18  ;;  %v105_v29 = vadd.f32 %v95_v19, %v60_v3  ;;  %p316_p5 = por %p315_p4, %p314_p3 }
  0x30   :  { %179 = vrot.lane.b32.xlu1 %v419_v24, %s365_s1  ;;  %v427_v28 = vsub.f32 %v61_v11, %v118_v26  ;;  %v96_v30 = vsel %vm93_vm1, %v94_v21, %v95_v19  ;;  %v98_v32 = vrot.slane %v88_v23, 1  ;;  %v151_v37 = vmul.f32 2.0, %v419_v24 }
  0x31   :  { %v154_v33 = vmul.f32 2.0, %v423_v27  ;;  %v433_v34 = vadd.f32 %v114_v10, %v105_v29  ;;  %v104_v35 = vadd.f32 %v96_v30, %v59_v7  ;;  %v65_v39 = vand.u32 2147483647, %v60_v3  ;;  %p317_p6 = pnand %p316_p5, %p310_p2 }
  0x32   :  { %v99_v36 = vsel %vm93_vm1, %v97_v31, %v98_v32  ;;  %v66_v42 = vand.u32 2147483647, %v61_v11  ;;  %v69_v43 = vsel %vm68_vm2, %v64_v38, 0.0  ;;  %v153_v45 = vmul.f32 2.0, %v427_v28 }
  0x33   :  { %161 = vrot.lane.b32.xlu0 %v152_v25, %s366_s10  ;;  %v439_v40 = vadd.f32 %v115_v20, %v104_v35  ;;  %v106_v41 = vadd.f32 %v99_v36, %v61_v11  ;;  %v70_v44 = vsel %vm68_vm2, %v65_v39, 0.0  ;;  %v107_v46 = vadd.f32 %v98_v32, %v62_v12 }
  0x34   :  { %183 = vrot.lane.b32.xlu1 %v427_v28, %s365_s1  ;;  %v71_v47 = vadd.f32 %v70_v44, %v69_v43  ;;  %v67_v48 = vand.u32 2147483647, %v62_v12  ;;  %v72_v49 = vsel %vm68_vm2, %v66_v42, 0.0  ;;  %v63_v62 = vld [vmem:[#allocation8] sm:$0x1] }
  0x35   :  { %v444_v50 = vadd.f32 %v118_v26, %v106_v41  ;;  %v446_v53 = vadd.f32 %v117_v18, %v107_v46 }
  0x36   :  { %v73_v51 = vadd.f32 %v72_v49, %v71_v47  ;;  %v74_v52 = vsel %vm68_vm2, %v67_v48, 0.0 }
  0x37   :  { %165 = vrot.lane.b32.xlu0 %v154_v33, %s366_s10 }
  0x38   :  { %137 = vrot.lane.b32.xlu1 %v433_v34, %s365_s1  ;;  %v75_v54 = vadd.f32 %v74_v52, %v73_v51 }
  0x3a   :  { %v76_v55 = vrot.slane %v75_v54, 4 }
  0x3b   :  { %159 = vrot.lane.b32.xlu0 %v151_v37, %s366_s10 }
  0x3c   :  { %135 = vrot.lane.b32.xlu1 %v439_v40, %s365_s1  ;;  %v77_v56 = vadd.f32 %v76_v55, %v75_v54 }
  0x3e   :  { %v78_v58 = vrot.slane %v77_v56, 2 }
  0x3f   :  { %163 = vrot.lane.b32.xlu0 %v153_v45, %s366_s10 }
  0x40   :  { %139 = vrot.lane.b32.xlu1 %v444_v50, %s365_s1  ;;  %v79_v59 = vadd.f32 %v78_v58, %v77_v56 }
  0x42   :  { %v80_v60 = vrot.slane %v79_v59, 1 }
  0x43   :  { %141 = vrot.lane.b32.xlu0 %v446_v53, %s365_s1 }
  0x44   :  { %185 = vrot.lane.b32.xlu1 %v423_v27, %s365_s1  ;;  %v81_v61 = vadd.f32 %v80_v60, %v79_v59 }
  0x46   :  { %v82_v63 = vadd.f32 %v81_v61, %v63_v62 }
  0x48   :  { %84 = vst.msk [vmem:[#allocation8] sm:$0x1] %vm49_vm4, %v82_v63 }
  0x49   :  { %320 = shalt.err (!%p317_p6)
}
  0x4a   :  { %s321_s17 = scalar_lea.hbm %s495_s3, 16 }
  0x4b   :  { %p322_p7 = scmp.ne.s32.totalorder %s495_s3, %s321_s17  ;;  %p325_p8 = scmp.lt.u32.totalorder %s321_s17, %s495_s3 }
  0x4d   :  { %p327_p9 = pnand %p325_p8, %p322_p7 }
  0x4f   :  { %330 = shalt.err (!%p327_p9)
}
  0x50   :  { %245 = dma.vmem_to_hbm [thread:$0]  %s243_s12, 16, %s495_s3, [#allocation9]   ;;  %vm208_vm5 = vcmask 113664   ;;  %vm210_vm6 = vcmask 111616   ;;  %v195_v48 = vld [vmem:[#allocation7] sm:$0x1] }
  0x51   :  { %s369_s3 = smov [#allocation7]  }
  0x52   :  { %s232_s24 = sshll.u32 %s369_s3, 4  ;;  %s233_s24 = int_to_ptr.vmem [resolvable:$true] %s232_s24 }
  0x53   :  { %s331_s25 = scalar_lea.vmem %s233_s24, 16  ;;  %s335_s26 = scalar_lea.vmem %s233_s24, 32 }
  0x54   :  { %p332_p10 = scmp.ne.s32.totalorder %s233_s24, %s331_s25  ;;  %p336_p11 = scmp.lt.s32.totalorder %s233_s24, %s233_s24 }
  0x55   :  { %p337_p12 = scmp.lt.s32.totalorder %s335_s26, %s331_s25 }
  0x57   :  { %p338_p13 = por %p337_p12, %p336_p11 }
  0x59   :  { %p339_p0 = pnand %p338_p13, %p332_p10 }
  0xa1   :  { %v182_v0 = vpop.permute.xlu0 %181 }
  0xa2   :  { %v180_v1 = vpop.permute.xlu1 %179 }
  0xa5   :  { %v162_v2 = vpop.permute.xlu0 %161 }
  0xa6   :  { %v184_v3 = vpop.permute.xlu1 %183  ;;  %v172_v5 = vadd.f32 %v162_v2, %v414_v16 }
  0xa8   :  { %v192_v9 = vadd.f32 %v182_v0, %v172_v5 }
  0xa9   :  { %v166_v4 = vpop.permute.xlu0 %165 }
  0xaa   :  { %v138_v6 = vpop.permute.xlu1 %137  ;;  %v201_v17 = vand.u32 2147483647, %v192_v9 }
  0xab   :  { %v148_v7 = vsub.f32 %v433_v34, %v138_v6 }
  0xad   :  { %v160_v8 = vpop.permute.xlu0 %159  ;;  %v197_v12 = vand.u32 2147483647, %v148_v7 }
  0xae   :  { %v171_v10 = vadd.f32 %v160_v8, %v419_v24  ;;  %v136_v11 = vpop.permute.xlu1 %135  ;;  %v174_v24 = vadd.f32 %v166_v4, %v423_v27 }
  0xaf   :  { %v147_v14 = vsub.f32 %v439_v40, %v136_v11  ;;  %v205_v21 = vadd.f32 %v201_v17, %v197_v12 }
  0xb0   :  { %v191_v13 = vadd.f32 %v180_v1, %v171_v10 }
  0xb1   :  { %v164_v15 = vpop.permute.xlu0 %163  ;;  %v196_v19 = vand.u32 2147483647, %v147_v14 }
  0xb2   :  { %v200_v18 = vand.u32 2147483647, %v191_v13  ;;  %v173_v20 = vadd.f32 %v164_v15, %v427_v28  ;;  %v140_v16 = vpop.permute.xlu1 %139  ;;  %v211_v28 = vsel %vm210_vm6, %v205_v21, 0.0 }
  0xb3   :  { %v149_v25 = vsub.f32 %v444_v50, %v140_v16 }
  0xb4   :  { %v204_v22 = vadd.f32 %v200_v18, %v196_v19  ;;  %v193_v23 = vadd.f32 %v184_v3, %v173_v20 }
  0xb5   :  { %v142_v26 = vpop.permute.xlu0 %141  ;;  %v198_v31 = vand.u32 2147483647, %v149_v25 }
  0xb6   :  { %v209_v29 = vsel %vm208_vm5, %v204_v22, 0.0  ;;  %v202_v30 = vand.u32 2147483647, %v193_v23  ;;  %v150_v32 = vsub.f32 %v446_v53, %v142_v26  ;;  %v186_v33 = vpop.permute.xlu1 %185 }
  0xb7   :  { %v194_v36 = vadd.f32 %v186_v33, %v174_v24  ;;  %v212_v37 = vadd.f32 %v211_v28, %v209_v29 }
  0xb8   :  { %v206_v34 = vadd.f32 %v202_v30, %v198_v31  ;;  %v199_v35 = vand.u32 2147483647, %v150_v32 }
  0xb9   :  { %v203_v39 = vand.u32 2147483647, %v194_v36 }
  0xba   :  { %v213_v38 = vsel %vm208_vm5, %v206_v34, 0.0 }
  0xbb   :  { %v214_v40 = vadd.f32 %v213_v38, %v212_v37  ;;  %v207_v27 = vadd.f32 %v203_v39, %v199_v35 }
  0xbd   :  { %v215_v41 = vsel %vm210_vm6, %v207_v27, 0.0 }
  0xbe   :  { %v216_v42 = vadd.f32 %v215_v41, %v214_v40 }
  0xc0   :  { %v217_v43 = vrot.slane %v216_v42, 4 }
  0xc2   :  { %v218_v44 = vadd.f32 %v217_v43, %v216_v42 }
  0xc4   :  { %v219_v45 = vrot.slane %v218_v44, 2 }
  0xc6   :  { %v220_v46 = vadd.f32 %v219_v45, %v218_v44 }
  0xc8   :  { %v221_v47 = vrot.slane %v220_v46, 1 }
  0xca   :  { %v222_v49 = vadd.f32 %v221_v47, %v220_v46 }
  0xcc   :  { %v223_v50 = vadd.f32 %v222_v49, %v195_v48 }
  0xce   :  { %225 = vst.msk [vmem:[#allocation7] sm:$0x1] %vm47_vm3, %v223_v50 }
  0xcf   :  { %342 = shalt.err (!%p339_p0)
}
  0xd0   :  { %s343_s29 = scalar_lea.hbm %s494_s2, 16 }
  0xd1   :  { %p344_p1 = scmp.ne.s32.totalorder %s494_s2, %s343_s29  ;;  %p347_p2 = scmp.lt.u32.totalorder %s343_s29, %s494_s2 }
  0xd3   :  { %p349_p3 = pnand %p347_p2, %p344_p1 }
  0xd5   :  { %352 = shalt.err (!%p349_p3)
}
  0xd6   :  { %235 = dma.vmem_to_hbm [thread:$0]  %s233_s24, 16, %s494_s2, [#allocation4]  }
  0xd7   :  { %357 = dma.done.wait [#allocation4], 16  }
  0xd8   :  { %358 = vsyncadd [#allocation4], 4294967280 }
  0xd9   :  { %359 = dma.done.wait [#allocation9], 16  }
  0xda   :  { %360 = vsyncadd [#allocation9], 4294967280 }
  0xdb   :  { %252 = vsyncpa [#allocation3], 1 }
  0xdc   :  { %253 = vsyncpa [#allocation6], 1 }
  0xdd   :  { %254 = vsyncpa [#allocation4], 1 }
  0xde   :  { %255 = vsyncpa [#allocation9], 1 }

</bundles_post_ra>
